<compile_context>
chip_gen: v7x
topology: tpu7x:2x2x1
jax: 0.10.0
libtpu: 0.0.40
codegen_flags: <defaults>
</compile_context>

<pallas_src>
import functools

import jax
import jax.numpy as jnp
from jax.experimental import pallas as pl
from jax.experimental.pallas import tpu as pltpu


# --------------------------------------------------------------------------- #
# helpers
# --------------------------------------------------------------------------- #
def _round_up(x, m):
    return ((x + m - 1) // m) * m


def _pick_tile(m, target=512):
    """Largest divisor of m that is <= target and a multiple of 8, else m."""
    t = min(target, m)
    while t >= 8:
        if m % t == 0 and t % 8 == 0:
            return t
        t -= 1
    return m


def _pick_rows(h, w, target_rows=1024):
    """Largest divisor th of h with th*w <= target_rows and th*w % 8 == 0."""
    cand = [t for t in range(1, h + 1)
            if h % t == 0 and t * w <= target_rows and (t * w) % 8 == 0]
    if cand:
        return max(cand)
    return 1 if (w % 8 == 0) else h


def _vmem_limit_bytes():
    # Generation-aware VMEM request: ~60% of physical capacity (~38 MiB on
    # v7x's 64 MiB, ~76 MiB on v5e/v6e's 128 MiB), leaving headroom for
    # Mosaic-internal scratch and output double buffers.
    cap = None
    try:
        cap = getattr(pltpu.get_tpu_info(), "vmem_capacity_bytes", None)
    except Exception:
        cap = None
    if not cap:
        cap = 64 * 1024 * 1024
    return int(max(32 * 1024 * 1024, min(int(cap * 0.6), 100 * 1024 * 1024)))


# --------------------------------------------------------------------------- #
# 3x3 conv (+bias, +optional ReLU) kernel.
#
# Each input lives in HBM as a per-image slab x3[n] of shape ((H+2)*Wp, 3*Cin):
# spatial pad and the 3 dx taps are folded into K by the wrapper.  The kernel
# manually DMAs only the strip rows it needs (+ a 1-image-row halo on each
# side) into a double-buffered VMEM scratch, then issues ONE K=3*Cin matmul
# per dy (3 total) per input.  Several (x, w) pairs are summed in one pass,
# which lets conv1 consume `up` and `bridge` without materializing the concat.
# --------------------------------------------------------------------------- #
def _conv3x3_kernel(*refs, n_inputs, w_img, tile_m, apply_relu):
    x_hbm = refs[:n_inputs]                       # (N, (H+2)*Wp, 3*Cin_i), HBM
    w_refs = refs[n_inputs:2 * n_inputs]          # (3, 3*Cin_i, Coutp), VMEM
    b_ref = refs[2 * n_inputs]                    # (1, Coutp)
    o_ref = refs[2 * n_inputs + 1]                # (tile_m, Coutp)
    xbufs = refs[2 * n_inputs + 2:2 * n_inputs + 2 + n_inputs]   # (2, rows, K)
    sem = refs[2 * n_inputs + 2 + n_inputs]       # DMA sems (n_inputs, 2)

    n = pl.program_id(0)
    j = pl.program_id(1)
    nj = pl.num_programs(1)
    rows = tile_m + 2 * w_img                     # strip + halo

    def fetch(jj, slot, do):
        r0 = pl.multiple_of(jj * tile_m, 8)
        for i in range(n_inputs):
            cp = pltpu.make_async_copy(x_hbm[i].at[n, pl.ds(r0, rows)],
                                       xbufs[i].at[slot], sem.at[i, slot])
            do(cp)

    @pl.when(j == 0)
    def _():                                      # prime the pipeline per image
        fetch(j, 0, lambda cp: cp.start())

    slot = j & 1
    fetch(j, slot, lambda cp: cp.wait())

    @pl.when(j + 1 < nj)
    def _():                                      # prefetch next strip
        fetch(j + 1, 1 - slot, lambda cp: cp.start())

    acc = jnp.zeros(o_ref.shape, jnp.float32)
    for i in range(n_inputs):
        xs = xbufs[i][slot]                       # (tile_m + 2*Wp, 3*Cin_i)
        for dy in range(3):                       # 3 MXU pushes, K = 3*Cin_i
            lhs = xs[dy * w_img:dy * w_img + tile_m, :]
            acc = acc + jnp.dot(lhs, w_refs[i][dy],
                                preferred_element_type=jnp.float32)
    acc = acc + b_ref[...].astype(jnp.float32)
    if apply_relu:
        acc = jnp.maximum(acc, 0.0)
    o_ref[...] = acc.astype(o_ref.dtype)


def conv3x3_relu(xs_nhwc, ws_oihw, bias, *, apply_relu=True, tile_target=512):
    """out = ReLU(sum_i conv3x3(x_i, w_i) + bias) with SAME padding (NHWC)."""
    N, H, W, _ = xs_nhwc[0].shape
    Cout = ws_oihw[0].shape[0]
    Coutp = _round_up(Cout, 128)            # lane-dense output stores
    Wp = _round_up(W, 8)                    # aligned dy sublane slices
    M = H * Wp
    tm = _pick_tile(M, tile_target)
    rows = tm + 2 * Wp

    x3_flat, w3, in_specs, scratch = [], [], [], []
    flops = 0
    bytes_acc = N * M * Coutp * 4 + Coutp * 4
    for x, w in zip(xs_nhwc, ws_oihw):
        C = x.shape[-1]
        # 1 row pad top/bottom; 1 col left, 1 + (Wp - W) cols right.
        xp = jnp.pad(x, ((0, 0), (1, 1), (1, 1 + Wp - W), (0, 0)))
        # fold the 3 dx taps into channels: (N, H+2, Wp, 3*C) -> flat rows.
        x3 = jnp.concatenate([xp[:, :, dx:dx + Wp, :] for dx in range(3)],
                             axis=-1)
        x3_flat.append(x3.reshape(N, (H + 2) * Wp, 3 * C))
        # (Cout, C, 3, 3) -> (dy, dx, C, Cout) -> (3, 3*C, Coutp); the (dx, C)
        # flattening matches the x3 channel order above.
        wk = jnp.transpose(w, (2, 3, 1, 0)).reshape(3, 3 * C, Cout)
        w3.append(jnp.pad(wk, ((0, 0), (0, 0), (0, Coutp - Cout))))
        in_specs.append(pl.BlockSpec(memory_space=pl.ANY))
        scratch.append(pltpu.VMEM((2, rows, 3 * C), xs_nhwc[0].dtype))
        flops += 2 * N * M * 3 * (3 * C) * Coutp
        bytes_acc += N * (H + 2) * Wp * 3 * C * 4 + 3 * 3 * C * Coutp * 4

    for w in w3:
        in_specs.append(pl.BlockSpec(w.shape, lambda n, j: (0, 0, 0)))
    in_specs.append(pl.BlockSpec((1, Coutp), lambda n, j: (0, 0)))
    scratch.append(pltpu.SemaphoreType.DMA((len(x3_flat), 2)))

    bias_p = jnp.pad(bias, (0, Coutp - Cout)).reshape(1, Coutp)

    kernel = functools.partial(_conv3x3_kernel, n_inputs=len(x3_flat),
                               w_img=Wp, tile_m=tm, apply_relu=apply_relu)
    out = pl.pallas_call(
        kernel,
        out_shape=jax.ShapeDtypeStruct((N, M, Coutp), xs_nhwc[0].dtype),
        grid_spec=pltpu.PrefetchScalarGridSpec(
            num_scalar_prefetch=0,
            grid=(N, M // tm),
            in_specs=in_specs,
            out_specs=pl.BlockSpec((None, tm, Coutp), lambda n, j: (n, j, 0)),
            scratch_shapes=scratch,
        ),
        compiler_params=pltpu.CompilerParams(
            # j is "arbitrary": the manual halo prefetch chains across strips.
            dimension_semantics=("parallel", "arbitrary"),
            vmem_limit_bytes=_vmem_limit_bytes()),
        cost_estimate=pl.CostEstimate(flops=int(flops), transcendentals=0,
                                      bytes_accessed=int(bytes_acc)),
    )(*x3_flat, *w3, bias_p)
    return out.reshape(N, H, Wp, Coutp)[:, :, :W, :Cout]


# --------------------------------------------------------------------------- #
# ConvTranspose2d(k=2, stride=2): each input pixel maps to a disjoint 2x2
# output block, so out[2h+a, 2w+b, c] = x[h, w, :] @ W[:, c, a, b] + bias[c].
# The a=0/a=1 weights are fused into one (Cin, 4*Coutp) operand; one dot per
# TH-row strip, the two lane-halves stored into an (N, H, 2, W, 2*Coutp)
# buffer whose NHWC view is a free row-major reshape.
# --------------------------------------------------------------------------- #
def _conv_transpose2x2_kernel(x_ref, w_ref, b_ref, o_ref, *, th, w_img, c2):
    # x_ref: (TH*W, Cin); w_ref: (Cin, 2*c2); b_ref: (1, 2*c2)
    # o_ref: (TH, 2, W, c2) with o_ref[h, a, w, b*Coutp + c] = up[2h+a, 2w+b, c]
    y = jnp.dot(x_ref[...], w_ref[...], preferred_element_type=jnp.float32)
    y = (y + b_ref[...].astype(jnp.float32)).astype(o_ref.dtype)
    o_ref[:, 0] = y[:, :c2].reshape(th, w_img, c2)
    o_ref[:, 1] = y[:, c2:].reshape(th, w_img, c2)


def conv_transpose2x2(x_nhwc, weight_iokk, bias, *, target_rows=1024):
    """ConvTranspose2d(k=2, stride=2).  weight: (Cin, Cout, 2, 2) like PyTorch."""
    N, H, W, Cin = x_nhwc.shape
    Cout = weight_iokk.shape[1]
    c2 = _round_up(2 * Cout, 128)           # lane-dense output stores
    Coutp = c2 // 2
    th = _pick_rows(H, W, target_rows)      # TH*W matmul rows per grid step

    # (Cin, Cout, a, b) -> (a, b, Cin, Cout) -> pad Cout -> (Cin, 2*c2)
    # column index = a*c2 + b*Coutp + c.
    w_ab = jnp.transpose(weight_iokk, (2, 3, 0, 1))
    w_ab = jnp.pad(w_ab, ((0, 0), (0, 0), (0, 0), (0, Coutp - Cout)))
    wcat = jnp.transpose(w_ab, (2, 0, 1, 3)).reshape(Cin, 2 * c2)
    bcat = jnp.tile(jnp.pad(bias, (0, Coutp - Cout)), 4).reshape(1, 2 * c2)
    x_flat = x_nhwc.reshape(N, H * W, Cin)

    flops = 2 * N * H * W * Cin * (2 * c2)
    bytes_acc = (int(x_flat.size) + int(wcat.size) + int(bcat.size)
                 + N * H * 2 * W * c2) * 4

    kernel = functools.partial(_conv_transpose2x2_kernel, th=th, w_img=W, c2=c2)
    out = pl.pallas_call(
        kernel,
        out_shape=jax.ShapeDtypeStruct((N, H, 2, W, c2), x_nhwc.dtype),
        grid_spec=pltpu.PrefetchScalarGridSpec(
            num_scalar_prefetch=0,
            grid=(N, H // th),
            in_specs=[
                pl.BlockSpec((None, th * W, Cin), lambda n, s: (n, s, 0)),
                pl.BlockSpec((Cin, 2 * c2), lambda n, s: (0, 0)),
                pl.BlockSpec((1, 2 * c2), lambda n, s: (0, 0)),
            ],
            out_specs=pl.BlockSpec((None, th, 2, W, c2),
                                   lambda n, s: (n, s, 0, 0, 0)),
        ),
        compiler_params=pltpu.CompilerParams(
            dimension_semantics=("parallel", "parallel"),
            vmem_limit_bytes=_vmem_limit_bytes()),
        cost_estimate=pl.CostEstimate(flops=int(flops), transcendentals=0,
                                      bytes_accessed=int(bytes_acc)),
    )(x_flat, wcat, bcat)
    # (N, H, 2, W, 2, Coutp) -> drop channel pad -> (N, 2H, 2W, Cout): free
    # row-major reshapes around a cheap lane slice (no-op when Coutp == Cout).
    out = out.reshape(N, H, 2, W, 2, Coutp)[..., :Cout]
    return out.reshape(N, 2 * H, 2 * W, Cout)


# ------------------------------ UpBlock ------------------------------------ #
def init_upblock_params(key, in_size, out_size):
    ks = jax.random.split(key, 6)

    def u(k, shape, fan_in):
        bound = 1.0 / jnp.sqrt(float(fan_in))
        return jax.random.uniform(k, shape, jnp.float32, -bound, bound)

    return {
        "up_w": u(ks[0], (in_size, out_size, 2, 2), in_size * 4),
        "up_b": u(ks[1], (out_size,), in_size * 4),
        "conv1_w": u(ks[2], (out_size, in_size, 3, 3), in_size * 9),
        "conv1_b": u(ks[3], (out_size,), in_size * 9),
        "conv2_w": u(ks[4], (out_size, out_size, 3, 3), out_size * 9),
        "conv2_b": u(ks[5], (out_size,), out_size * 9),
    }


def up_block_forward(params, x_nchw, bridge_nchw):
    x = jnp.transpose(x_nchw, (0, 2, 3, 1))          # NCHW -> NHWC
    bridge = jnp.transpose(bridge_nchw, (0, 2, 3, 1))
    up = conv_transpose2x2(x, params["up_w"], params["up_b"])
    c_up = up.shape[-1]
    # conv1 over torch.cat([up, bridge], 1) WITHOUT materializing the concat:
    # split conv1's weight along its input-channel axis instead.
    w1_up = params["conv1_w"][:, :c_up]
    w1_br = params["conv1_w"][:, c_up:]
    # TODO(synk): Dropout(0.6) treated as identity (eval-mode semantics).
    h = conv3x3_relu([up, bridge], [w1_up, w1_br], params["conv1_b"])
    h = conv3x3_relu([h], [params["conv2_w"]], params["conv2_b"])
    return jnp.transpose(h, (0, 3, 1, 2))            # NHWC -> NCHW


# ------------------------------ reference ---------------------------------- #
def _reference(params, x_nchw, bridge_nchw):
    x = jnp.transpose(x_nchw, (0, 2, 3, 1))
    bridge = jnp.transpose(bridge_nchw, (0, 2, 3, 1))
    N, H, W, _ = x.shape
    Cout = params["up_w"].shape[1]
    up = jnp.einsum("nijc,coab->niajbo", x, params["up_w"],
                    precision=jax.lax.Precision.HIGHEST)
    up = up.reshape(N, 2 * H, 2 * W, Cout) + params["up_b"]
    out = jnp.concatenate([up, bridge], axis=-1)

    def conv(h, w_oihw, b):
        w_hwio = jnp.transpose(w_oihw, (2, 3, 1, 0))
        y = jax.lax.conv_general_dilated(
            h, w_hwio, (1, 1), "SAME",
            dimension_numbers=("NHWC", "HWIO", "NHWC"),
            precision=jax.lax.Precision.HIGHEST)
        return jnp.maximum(y + b, 0.0)

    h = conv(out, params["conv1_w"], params["conv1_b"])
    h = conv(h, params["conv2_w"], params["conv2_b"])
    return jnp.transpose(h, (0, 3, 1, 2))


if __name__ == "__main__":
    key = jax.random.PRNGKey(0)
    k_params, k_x, k_b = jax.random.split(key, 3)

    in_size, out_size = 4, 2
    N, H, W = 2, 8, 8  # x is the low-res feature map; bridge is 2x its spatial size

    params = init_upblock_params(k_params, in_size, out_size)
    x = jax.random.normal(k_x, (N, in_size, H, W), jnp.float32)
    bridge = jax.random.normal(
        k_b, (N, in_size - out_size, 2 * H, 2 * W), jnp.float32)

    out = jax.block_until_ready(up_block_forward(params, x, bridge))
    ref = jax.block_until_ready(_reference(params, x, bridge))

    assert out.shape == (N, out_size, 2 * H, 2 * W), out.shape
    err = float(jnp.max(jnp.abs(out - ref)))
    assert bool(jnp.allclose(out, ref, atol=1e-3, rtol=1e-3)), err
    print("KERNEL_OK")
</pallas_src>

<mosaic_0001>
module attributes {stable_mosaic.version = 11 : i64} {
  func.func @_conv_transpose2x2_kernel(%arg0: i32, %arg1: i32, %arg2: memref<1x64x4xf32, #tpu.memory_space<vmem>>, %arg3: memref<4x256xf32, #tpu.memory_space<vmem>>, %arg4: memref<1x256xf32, #tpu.memory_space<vmem>>, %arg5: memref<1x8x2x8x128xf32, #tpu.memory_space<vmem>>) attributes {dimension_semantics = [#tpu.dimension_semantics<parallel>, #tpu.dimension_semantics<parallel>], iteration_bounds = array<i64: 2, 1>, scalar_prefetch = 0 : i64, scratch_operands = 0 : i64, tpu.core_type = #tpu.core_type<tc>, window_params = [{transform_indices = @transform_0, window_bounds = array<i64: 1, 64, 4>}, {pipeline_mode = #tpu.pipeline_mode<synchronous>, transform_indices = @transform_1, window_bounds = array<i64: 4, 256>}, {pipeline_mode = #tpu.pipeline_mode<synchronous>, transform_indices = @transform_2, window_bounds = array<i64: 1, 256>}, {transform_indices = @transform_3, window_bounds = array<i64: 1, 8, 2, 8, 128>}]} {
    %c0 = arith.constant 0 : index
    %c0_0 = arith.constant 0 : index
    %c0_1 = arith.constant 0 : index
    %0 = vector.load %arg2[%c0, %c0_0, %c0_1] : memref<1x64x4xf32, #tpu.memory_space<vmem>>, vector<1x64x4xf32>
    %1 = vector.shape_cast %0 : vector<1x64x4xf32> to vector<64x4xf32>
    %c0_2 = arith.constant 0 : index
    %c0_3 = arith.constant 0 : index
    %2 = vector.load %arg3[%c0_2, %c0_3] : memref<4x256xf32, #tpu.memory_space<vmem>>, vector<4x256xf32>
    %cst = arith.constant dense<0.000000e+00> : vector<64x256xf32>
    %3 = tpu.matmul %1, %2, %cst {dimension_numbers = #tpu.dot_dimension_numbers<[1], [0], [0], [1], [0, 0, 1, 1], [], []>} : vector<64x4xf32>, vector<4x256xf32>, vector<64x256xf32> -> vector<64x256xf32>
    %c0_4 = arith.constant 0 : index
    %c0_5 = arith.constant 0 : index
    %4 = vector.load %arg4[%c0_4, %c0_5] : memref<1x256xf32, #tpu.memory_space<vmem>>, vector<1x256xf32>
    %5 = vector.broadcast %4 : vector<1x256xf32> to vector<64x256xf32>
    %6 = arith.addf %3, %5 : vector<64x256xf32>
    %7 = vector.extract_strided_slice %6 {offsets = [0, 0], sizes = [64, 128], strides = [1, 1]} : vector<64x256xf32> to vector<64x128xf32>
    %8 = vector.shape_cast %7 : vector<64x128xf32> to vector<8x8x128xf32>
    %c0_6 = arith.constant 0 : index
    %c0_7 = arith.constant 0 : index
    %c0_8 = arith.constant 0 : index
    %c0_9 = arith.constant 0 : index
    %c0_10 = arith.constant 0 : index
    %9 = vector.load %arg5[%c0_6, %c0_7, %c0_8, %c0_9, %c0_10] : memref<1x8x2x8x128xf32, #tpu.memory_space<vmem>>, vector<1x8x1x8x128xf32>
    %10 = vector.shape_cast %9 : vector<1x8x1x8x128xf32> to vector<8x8x128xf32>
    %11 = vector.shape_cast %8 : vector<8x8x128xf32> to vector<1x8x1x8x128xf32>
    tpu.vector_store %arg5[%c0_6, %c0_7, %c0_8, %c0_9, %c0_10], %11 {strides = array<i32>} : memref<1x8x2x8x128xf32, #tpu.memory_space<vmem>>, vector<1x8x1x8x128xf32>,
    %12 = vector.extract_strided_slice %6 {offsets = [0, 128], sizes = [64, 128], strides = [1, 1]} : vector<64x256xf32> to vector<64x128xf32>
    %13 = vector.shape_cast %12 : vector<64x128xf32> to vector<8x8x128xf32>
    %c0_11 = arith.constant 0 : index
    %c0_12 = arith.constant 0 : index
    %c1 = arith.constant 1 : index
    %c0_13 = arith.constant 0 : index
    %c0_14 = arith.constant 0 : index
    %14 = vector.load %arg5[%c0_11, %c0_12, %c1, %c0_13, %c0_14] : memref<1x8x2x8x128xf32, #tpu.memory_space<vmem>>, vector<1x8x1x8x128xf32>
    %15 = vector.shape_cast %14 : vector<1x8x1x8x128xf32> to vector<8x8x128xf32>
    %16 = vector.shape_cast %13 : vector<8x8x128xf32> to vector<1x8x1x8x128xf32>
    tpu.vector_store %arg5[%c0_11, %c0_12, %c1, %c0_13, %c0_14], %16 {strides = array<i32>} : memref<1x8x2x8x128xf32, #tpu.memory_space<vmem>>, vector<1x8x1x8x128xf32>,
    return
  }
  func.func @transform_0(%arg0: i32, %arg1: i32) -> (i32, i32, i32) {
    %c0_i32 = arith.constant 0 : i32
    %c0_i32_0 = arith.constant 0 : i32
    return %arg0, %arg1, %c0_i32 : i32, i32, i32
  }
  func.func @transform_1(%arg0: i32, %arg1: i32) -> (i32, i32) {
    %c0_i32 = arith.constant 0 : i32
    %c0_i32_0 = arith.constant 0 : i32
    %c0_i32_1 = arith.constant 0 : i32
    return %c0_i32, %c0_i32_0 : i32, i32
  }
  func.func @transform_2(%arg0: i32, %arg1: i32) -> (i32, i32) {
    %c0_i32 = arith.constant 0 : i32
    %c0_i32_0 = arith.constant 0 : i32
    %c0_i32_1 = arith.constant 0 : i32
    return %c0_i32, %c0_i32_0 : i32, i32
  }
  func.func @transform_3(%arg0: i32, %arg1: i32) -> (i32, i32, i32, i32, i32) {
    %c0_i32 = arith.constant 0 : i32
    %c0_i32_0 = arith.constant 0 : i32
    %c0_i32_1 = arith.constant 0 : i32
    %c0_i32_2 = arith.constant 0 : i32
    return %arg0, %arg1, %c0_i32, %c0_i32_0, %c0_i32_1 : i32, i32, i32, i32, i32
  }
}

</mosaic_0001>

<bundles_post_ra>
// kernel: tpu_custom_call.1
= control target key start
LH: loop header
LB: loop body
LE: loop exit
PB: predicated region body
PF: predicated region fallthrough
CT: control target
= control target key end

     0   :  { %8 = vsyncpa [#allocation3], 0  ;;  %s829_s0 = inlined_call_operand.vmem [shape: f32[2,64,4], index: 0, kind: input, shape index: {}]   ;;  %s830_s1 = inlined_call_operand.vmem [shape: f32[4,256], index: 1, kind: input, shape index: {}]   ;;  %s831_s2 = inlined_call_operand.vmem [shape: f32[1,256], index: 2, kind: input, shape index: {}]   ;;  %s832_s3 = inlined_call_operand.hbm [shape: f32[2,8,2,8,128], index: 3, kind: output, shape index: {}]  }
   0x1   :  { %10 = vsyncpa [#allocation3 + $0x1], 0  ;;  %s677_s12 = smov 0   ;;  %s679_s13 = smov 0  }
   0x2   :  { %s681_s14 = smov 0   ;;  %s683_s15 = smov 0  }
   0x3   :  { %s685_s16 = smov 0   ;;  %s687_s17 = smov 0  }
   0x4 LB: > { %s479_s18 = sadd.s32 4294967295, %s651_s17   ;;  %s480_s19 = sadd.s32 4294967294, %s651_s17   ;;  %s651_s17 = sphi %s687_s17, %s16_s17   ;;  %s647_s16 = sphi %s685_s16, %s839_s16   ;;  %s643_s15 = sphi %s683_s15, %s838_s15   ;;  %s639_s14 = sphi %s681_s14, %s837_s14   ;;  %s635_s13 = sphi %s679_s13, %s836_s13   ;;  %s631_s12 = sphi %s677_s12, %s835_s12  }
   0x5   : > { %s28_s20 = sadd.s32 1, %s647_s16  ;;  %s107_s21 = sadd.s32 1, %s639_s14 }
   0x6   : > { %p30_p0 = scmp.ge.s32.totalorder %s28_s20, 2  ;;  %p117_p1 = scmp.ne.s32.totalorder %s639_s14, %s635_s13 }
   0x7   : > { %p118_p2 = scmp.eq.s32.totalorder %s479_s18, 1  ;;  %p123_p3 = scmp.ne.s32.totalorder %s635_s13, %s631_s12 }
   0x8   : > { %s841_s20 = smov (%p30_p0, %s28_s20), 0  ;;  %p124_p5 = scmp.eq.s32.totalorder %s480_s19, 1 }
   0x9   : > { %p717_p4 = por %p118_p2, %p117_p1  ;;  %s102_s23 = ssub.s32 %s647_s16, %s841_s20 }
   0xa   : > { %p483_p6 = scmp.ge.s32.totalorder %s651_s17, 1  ;;  %p105_p7 = scmp.eq.s32.totalorder %s102_s23, 0 }
   0xb   : > { %p724_p8 = por %p124_p5, %p123_p3  ;;  %p161_p9 = scmp.lt.s32.totalorder %s651_s17, 3 }
   0xc   : > { %s730_s25 = scalar_select %p105_p7, %s639_s14, %s107_s21  }
   0xd   : > { %p162_p10 = pnand %p483_p6, %p161_p9 }
   0xe   : > { %v208_v0 = vld [vmem:[%s830_s1] sm:$0xff] (!%p162_p10)  ;;  %vm248_vm0 = vcmask (!%p162_p10), 1043456   ;;  %p190_p11 = scmp.lt.s32.totalorder (!%p162_p10), %s643_s15, 1  ;;  %v653_v2 = vmov (!%p162_p10), 0.0   ;;  %vm223_vm1 = vcmask (!%p162_p10), 31744   ;;  %v211_v11 = vlaneseq (!%p162_p10)  ;;  %s186_s6 = sand.u32 (!%p162_p10), 1, %s635_s13  }
   0xf   : > { %165 = sbr.rel (%p162_p10) target bundleno = 270 (0x10e), region = 32  ;;  %v222_v1 = vcombine.high (!%p162_p10), %v208_v0, %v208_v0  ;;  %317 = vmatprep.mubr.f32.mxu0 (!%p162_p10), %v653_v2  ;;  %341 = vmatprep.mubr.f32.mxu1 (!%p162_p10), %v653_v2  ;;  %v209_v14 = vld [vmem:[%s831_s2] sm:$0x3] (!%p162_p10)  ;;  %s484_s9 = sshll.u32 (!%p162_p10), %s186_s6, 7 }
  0x10   : > { %v212_v12 = vshrl.u32 (!%p162_p10), %v211_v11, 7  ;;  %s754_s10 = scalar_lea.vmem (!%p162_p10), [#allocation2], %s484_s9  ;;  %s511_s11 = sshll.u32 (!%p162_p10), %s643_s15, 11 }
  0x11   : > { %487 = vmatprep.subr.msk.mxu0 (!%p162_p10), %vm248_vm0, %v222_v1  ;;  %512 = vmatprep.subr.msk.mxu1 (!%p162_p10), %vm248_vm0, %v222_v1  ;;  %s400_s18 = sshll.u32 (!%p162_p10), %s754_s10, 4  ;;  %s783_s23 = scalar_lea.sflag (!%p162_p10), [#allocation3], %s186_s6  ;;  %s775_s18 = int_to_ptr.vmem [resolvable:$true] %s400_s18 }
  0x12   : > { %488 = vmatpush1.msk.msra.mxu0 (!%p162_p10), %vm248_vm0, %v208_v0  ;;  %513 = vmatpush1.msk.msra.mxu1 (!%p162_p10), %vm248_vm0, %v208_v0  ;;  %v213_v13 = vsub.s32 (!%p162_p10), 0, %v212_v12  ;;  %v217_v15 = vsub.s32 (!%p162_p10), 1, %v212_v12  ;;  %s573_s26 = scalar_lea.vmem (!%p162_p10), %s775_s18, 2048  ;;  %s654_s27 = smov (!%p162_p10), [#allocation2]  }
  0x13   : > { %p574_p12 = scmp.ne.s32.totalorder (!%p162_p10), %s775_s18, %s573_s26 }
  0x14   : > { %v214_v16 = vrot.slane (!%p162_p10), %v209_v14, %v213_v13  ;;  %v218_v17 = vrot.slane (!%p162_p10), %v209_v14, %v217_v15 }
  0x15   : > { %p575_p13 = pnand (!%p162_p10), %p574_p12, %p717_p4 }
  0x16   : > { %s191_s28 = scalar_select %p190_p11, %s643_s15, 1 }
  0x17   : > { %s773_s15 = scalar_lea.hbm %s832_s3, %s511_s11  ;;  %p576_p0 = pneg %p575_p13 }
  0x18   : > { %s510_s29 = sshll.u32 %s191_s28, 6  ;;  %s577_s28 = sshll.u32 %s654_s27, 4  ;;  %s578_s28 = int_to_ptr.vmem [resolvable:$false] %s577_s28 }
  0x19   : > { %s197_s5 = scalar_lea.vmem %s829_s0, %s510_s29  ;;  %s579_s29 = scalar_lea.vmem %s578_s28, 4096 }
  0x1a   : > { %v200_v3 = vld [vmem:[%s197_s5] sm:$0xff]  ;;  %v201_v5 = vld [vmem:[%s197_s5 + $0x8] sm:$0xff]  ;;  %v202_v7 = vld [vmem:[%s197_s5 + $0x10] sm:$0xff]  ;;  %p580_p1 = scmp.lt.s32.totalorder %s775_s18, %s578_s28  ;;  %p581_p2 = scmp.lt.s32.totalorder %s579_s29, %s573_s26 }
  0x1b   : > { %v204_v4 = vld [vmem:[%s197_s5 + $0x20] sm:$0xff]  ;;  %489 = vmatmul.mubr.msk.f32.vlgmr.msra.gmra.mrb[0].mxu0 %vm223_vm1, %v200_v3  ;;  %v205_v6 = vld [vmem:[%s197_s5 + $0x28] sm:$0xff]  ;;  %v206_v8 = vld [vmem:[%s197_s5 + $0x30] sm:$0xff] }
  0x1c   : > { %493 = vmatmul.mubr.msk.f32.vlgmr.msra.gmra.mrb[0].mxu1 %vm223_vm1, %v204_v4  ;;  %323 = vmatprep.mubr.f32.mxu0 %v653_v2  ;;  %v203_v9 = vld [vmem:[%s197_s5 + $0x18] sm:$0xff]  ;;  %p582_p3 = por %p581_p2, %p580_p1 }
  0x1d   : > { %347 = vmatprep.mubr.f32.mxu1 %v653_v2  ;;  %v207_v10 = vld [vmem:[%s197_s5 + $0x38] sm:$0xff] }
  0x1e   : > { %p583_p5 = pnand %p582_p3, %p576_p0 }
  0x1f   : > { %490 = vmatmul.mubr.msk.f32.gmra.mrb[2].mxu0 %vm223_vm1, %v201_v5 }
  0x20   : > { %494 = vmatmul.mubr.msk.f32.gmra.mrb[2].mxu1 %vm223_vm1, %v205_v6  ;;  %329 = vmatprep.mubr.f32.mxu0 %v653_v2 }
  0x21   : > { %353 = vmatprep.mubr.f32.mxu1 %v653_v2 }
  0x23   : > { %491 = vmatmul.mubr.msk.f32.gmra.mrb[4].mxu0 %vm223_vm1, %v202_v7 }
  0x24   : > { %495 = vmatmul.mubr.msk.f32.gmra.mrb[4].mxu1 %vm223_vm1, %v206_v8  ;;  %335 = vmatprep.mubr.f32.mxu0 %v653_v2 }
  0x25   : > { %359 = vmatprep.mubr.f32.mxu1 %v653_v2 }
  0x27   : > { %492 = vmatmul.mubr.msk.f32.gmra.mrb[6].mxu0 %vm223_vm1, %v203_v9 }
  0x28   : > { %496 = vmatmul.mubr.msk.f32.gmra.mrb[6].mxu1 %vm223_vm1, %v207_v10 }
  0xee   : > { %v319_v18 = vpop.f32.mrb[0].mxu0 }
  0xef   : > { %v343_v19 = vpop.f32.mrb[0].mxu1  ;;  %v320_v20 = vadd.f32 %v319_v18, %v214_v16  ;;  %v321_v22 = vpop.f32.mrb[1].mxu0 }
  0xf0   : > { %v344_v21 = vadd.f32 %v343_v19, %v214_v16  ;;  %v345_v23 = vpop.f32.mrb[1].mxu1  ;;  %v322_v24 = vadd.f32 %v321_v22, %v218_v17 }
  0xf1   : > { %v346_v25 = vadd.f32 %v345_v23, %v218_v17  ;;  %366 = vst [vmem:[%s754_s10] sm:$0xff] %v320_v20 }
  0xf2   : > { %370 = vst [vmem:[%s754_s10 + $0x40] sm:$0xff] %v344_v21  ;;  %497 = vst [vmem:[%s754_s10 + $0x8] sm:$0xff] %v322_v24  ;;  %v325_v26 = vpop.f32.mrb[2].mxu0 }
  0xf3   : > { %501 = vst [vmem:[%s754_s10 + $0x48] sm:$0xff] %v346_v25  ;;  %v349_v27 = vpop.f32.mrb[2].mxu1  ;;  %v326_v28 = vadd.f32 %v325_v26, %v214_v16  ;;  %v327_v30 = vpop.f32.mrb[3].mxu0 }
  0xf4   : > { %v350_v29 = vadd.f32 %v349_v27, %v214_v16  ;;  %v351_v31 = vpop.f32.mrb[3].mxu1  ;;  %v328_v32 = vadd.f32 %v327_v30, %v218_v17 }
  0xf5   : > { %v352_v33 = vadd.f32 %v351_v31, %v218_v17  ;;  %367 = vst [vmem:[%s754_s10 + $0x10] sm:$0xff] %v326_v28 }
  0xf6   : > { %371 = vst [vmem:[%s754_s10 + $0x50] sm:$0xff] %v350_v29  ;;  %498 = vst [vmem:[%s754_s10 + $0x18] sm:$0xff] %v328_v32  ;;  %v331_v34 = vpop.f32.mrb[4].mxu0 }
  0xf7   : > { %502 = vst [vmem:[%s754_s10 + $0x58] sm:$0xff] %v352_v33  ;;  %v355_v35 = vpop.f32.mrb[4].mxu1  ;;  %v332_v36 = vadd.f32 %v331_v34, %v214_v16  ;;  %v333_v38 = vpop.f32.mrb[5].mxu0 }
  0xf8   : > { %v356_v37 = vadd.f32 %v355_v35, %v214_v16  ;;  %v357_v39 = vpop.f32.mrb[5].mxu1  ;;  %v334_v40 = vadd.f32 %v333_v38, %v218_v17 }
  0xf9   : > { %v358_v41 = vadd.f32 %v357_v39, %v218_v17  ;;  %368 = vst [vmem:[%s754_s10 + $0x20] sm:$0xff] %v332_v36 }
  0xfa   : > { %372 = vst [vmem:[%s754_s10 + $0x60] sm:$0xff] %v356_v37  ;;  %499 = vst [vmem:[%s754_s10 + $0x28] sm:$0xff] %v334_v40  ;;  %v337_v42 = vpop.f32.mrb[6].mxu0 }
  0xfb   : > { %503 = vst [vmem:[%s754_s10 + $0x68] sm:$0xff] %v358_v41  ;;  %v361_v43 = vpop.f32.mrb[6].mxu1  ;;  %v338_v44 = vadd.f32 %v337_v42, %v214_v16  ;;  %v339_v46 = vpop.f32.mrb[7].mxu0 }
  0xfc   : > { %v362_v45 = vadd.f32 %v361_v43, %v214_v16  ;;  %v363_v47 = vpop.f32.mrb[7].mxu1  ;;  %v340_v48 = vadd.f32 %v339_v46, %v218_v17 }
  0xfd   : > { %v364_v49 = vadd.f32 %v363_v47, %v218_v17  ;;  %369 = vst [vmem:[%s754_s10 + $0x30] sm:$0xff] %v338_v44 }
  0xfe   : > { %373 = vst [vmem:[%s754_s10 + $0x70] sm:$0xff] %v362_v45  ;;  %500 = vst [vmem:[%s754_s10 + $0x38] sm:$0xff] %v340_v48 }
  0xff   : > { %504 = vst [vmem:[%s754_s10 + $0x78] sm:$0xff] %v364_v49 }
 0x100   : > { %586 = shalt.err (!%p583_p5)
}
 0x101   : > { %s587_s30 = scalar_lea.hbm %s773_s15, 2048  ;;  %s591_s6 = scalar_lea.hbm %s832_s3, 4096 }
 0x102   : > { %p588_p6 = scmp.ne.s32.totalorder %s773_s15, %s587_s30  ;;  %p592_p10 = scmp.lt.u32.totalorder %s773_s15, %s832_s3 }
 0x103   : > { %p593_p11 = scmp.lt.u32.totalorder %s591_s6, %s587_s30  ;;  %p595_p13 = scmp.lt.u32.totalorder %s587_s30, %s773_s15 }
 0x104   : > { %p589_p7 = pnand %p588_p6, %p717_p4 }
 0x105   : > { %p594_p12 = por %p593_p11, %p592_p10 }
 0x106   : > { %p590_p9 = pneg %p589_p7 }
 0x107   : > { %p596_p0 = por %p595_p13, %p594_p12 }
 0x109   : > { %p597_p1 = pnand %p596_p0, %p590_p9 }
 0x10b   : > { %600 = shalt.err (!%p597_p1)
}
 0x10c   : > { %s655_s9 = smov 128   ;;  %s656_s10 = smov 8  }
 0x10d   : > { %514 = dma.vmem_to_hbm [thread:$0]  (%p717_p4), %s775_s18, 2048, %s773_s15, %s783_s23, %s655_s9, %s655_s9, %s656_s10  }
 0x10e PF: > { %p520_p2 = scmp.ge.s32.totalorder %s651_s17, 2  ;;  %s415_s11 = sand.u32 1, %s631_s12  }
 0x10f   : > { %s416_s19 = scalar_lea.sflag [#allocation3], %s415_s11 }
 0x110   : > { %p517_p3 = pnand %p520_p2, %p724_p8 }
 0x112   : > { %626 = dma.done.wait (!%p517_p3), %s416_s19, 2048  }
 0x113   : > { %628 = vsyncadd (!%p517_p3), %s416_s19, 4294965248  ;;  %s16_s17 = sadd.s32 1, %s651_s17   ;;  %s835_s12 = smov %s635_s13 }
 0x114   : > { %p13_p5 = scmp.ge.s32.totalorder %s16_s17, 4   ;;  %s836_s13 = smov %s639_s14 }
 0x115   : > { %s837_s14 = smov %s730_s25  ;;  %s838_s15 = smov %s647_s16 }
 0x116   : > { %s839_s16 = smov %s841_s20  ;;  %15 = sbr.rel (!%p13_p5) target bundleno = 4 (0x4), region = 68 }
 0x11d   :  { %421 = vsyncpa [#allocation3], 1 }
 0x11e   :  { %423 = vsyncpa [#allocation3 + $0x1], 1 }

</bundles_post_ra>
